<compile_context>
chip_gen: v7x
topology: tpu7x:2x2x1
jax: 0.10.0
libtpu: 0.0.40
codegen_flags: <defaults>
</compile_context>

<pallas_src>
import math
import functools

import jax
import jax.numpy as jnp
from jax.experimental import pallas as pl
from jax.experimental.pallas import tpu as pltpu


def _mha_kernel(x_ref, wq_ref, bq_ref, wkv_ref, bkv_ref, wo_ref, bo_ref, o_ref,
                *, num_heads, head_dim):
    H, D = num_heads, head_dim
    S, E = x_ref.shape                      # batch dim is squeezed by the BlockSpec
    cdt = x_ref.dtype                       # matmul compute dtype (bf16)
    f32 = jnp.float32

    x = x_ref[...]                                                     # (S, E) bf16

    # q = x @ Wq^T + bq   (bf16 operands, f32 accumulation on the MXU)
    q_f32 = jnp.dot(x, wq_ref[...], preferred_element_type=f32) + bq_ref[...]
    q_bf = q_f32.astype(cdt)

    # Fused K/V projection of the already-projected q (matches the PyTorch module):
    #   [k | v] = q @ [Wk^T | Wv^T] + [bk | bv]        -> (S, 2E) f32
    kv_f32 = jnp.dot(q_bf, wkv_ref[...], preferred_element_type=f32) + bkv_ref[...]

    # ---- Head split: single relayout per tensor (no per-head lane slices, no stack).
    # 1/sqrt(D) folded into the attention-q only.
    q_att_t = (q_f32 * (1.0 / math.sqrt(D))).T                        # (E, S) f32
    qh = jnp.swapaxes(q_att_t.reshape(H, D, S), 1, 2).astype(cdt)     # (H, S, D)
    kv_t = kv_f32.T.reshape(2 * H, D, S)                              # (2H, D, S) f32
    kht = kv_t[:H].astype(cdt)                                        # (H, D, S) = per-head K^T
    vht = kv_t[H:].astype(cdt)                                        # (H, D, S) = per-head V^T

    # ---- Scaled dot-product attention, batched over heads (canonical batched matmuls).
    s = jnp.einsum('hqd,hdk->hqk', qh, kht,
                   preferred_element_type=f32)                        # (H, S, S) f32
    s = s - jnp.max(s, axis=-1, keepdims=True)
    p = jnp.exp(s)
    p = p * pl.reciprocal(jnp.sum(p, axis=-1, keepdims=True), approx=True)

    # Attention output produced directly in head-transposed layout:
    #   oht[h, d, q] = sum_k V^T[h, d, k] * p[h, q, k]
    oht = jnp.einsum('hdk,hqk->hdq', vht, p.astype(cdt),
                     preferred_element_type=f32)                      # (H, D, S) f32

    # ---- Fused head-merge + output projection: one K=E matmul, no (H,S,E) intermediate.
    attn = oht.reshape(E, S).T.astype(cdt)                            # (S, E) bf16
    out = jnp.dot(attn, wo_ref[...], preferred_element_type=f32) + bo_ref[...]
    o_ref[...] = out.astype(o_ref.dtype)                              # lane-dense store


def multi_head_attention(x, params, *, num_heads, compute_dtype=jnp.bfloat16):
    """x: (B, S, E) float32.  params: dict of torch-layout weights/biases."""
    B, S, E = x.shape
    assert E % num_heads == 0
    D = E // num_heads
    f32 = jnp.float32

    # torch Linear weight is (out, in); pre-transpose to (in, out) so y = x @ Wt + b.
    wq_t = params["wq"].T.astype(compute_dtype)                              # (E, E)
    # Fuse K and V projections: (E, 2E) weight, (1, 2E) bias.
    wkv_t = jnp.concatenate([params["wk"].T, params["wv"].T],
                            axis=1).astype(compute_dtype)                    # (E, 2E)
    wo_t = params["wo"].T.astype(compute_dtype)                              # (E, E)
    bq = params["bq"].reshape(1, E).astype(f32)
    bkv = jnp.concatenate([params["bk"], params["bv"]]).reshape(1, 2 * E).astype(f32)
    bo = params["bo"].reshape(1, E).astype(f32)

    x_c = x.astype(compute_dtype)

    kernel = functools.partial(_mha_kernel, num_heads=num_heads, head_dim=D)

    # Advisory cost hint so XLA overlaps the wrapper-side prep with the call.
    flops = B * (2 * S * E * E                    # q projection
                 + 2 * S * E * (2 * E)            # fused k/v projection
                 + 2 * num_heads * S * S * D      # scores
                 + 2 * num_heads * S * S * D      # attn @ v
                 + 2 * S * E * E)                 # output projection
    transcendentals = B * num_heads * S * S       # exp in softmax
    bytes_accessed = (B * S * E * 2               # x in (bf16)
                      + B * S * E * 4             # out (f32)
                      + (E * E + E * 2 * E + E * E) * 2   # bf16 weights
                      + (E + 2 * E + E) * 4)      # f32 biases
    cost = pl.CostEstimate(flops=flops, transcendentals=transcendentals,
                           bytes_accessed=bytes_accessed)

    return pl.pallas_call(
        kernel,
        out_shape=jax.ShapeDtypeStruct((B, S, E), jnp.float32),
        grid_spec=pltpu.PrefetchScalarGridSpec(
            num_scalar_prefetch=0,
            grid=(B,),
            in_specs=[
                # Batch dim squeezed: kernel sees a plain (S, E) slab.
                pl.BlockSpec((None, S, E), lambda b: (b, 0, 0)),        # x
                pl.BlockSpec((E, E), lambda b: (0, 0)),                 # Wq^T
                pl.BlockSpec((1, E), lambda b: (0, 0)),                 # bq
                pl.BlockSpec((E, 2 * E), lambda b: (0, 0)),             # [Wk^T | Wv^T]
                pl.BlockSpec((1, 2 * E), lambda b: (0, 0)),             # [bk | bv]
                pl.BlockSpec((E, E), lambda b: (0, 0)),                 # Wo^T
                pl.BlockSpec((1, E), lambda b: (0, 0)),                 # bo
            ],
            out_specs=pl.BlockSpec((None, S, E), lambda b: (b, 0, 0)),
        ),
        compiler_params=pltpu.CompilerParams(
            dimension_semantics=("parallel",),
            vmem_limit_bytes=64 * 1024 * 1024),
        cost_estimate=cost,
    )(x_c, wq_t, bq, wkv_t, bkv, wo_t, bo)


def _reference(x, params, *, num_heads):
    """Pure-JAX f32 reference mirroring the PyTorch forward exactly."""
    B, S, E = x.shape
    D = E // num_heads
    lin = lambda a, w, b: a @ w.T + b
    q = lin(x, params["wq"], params["bq"])
    k = lin(q, params["wk"], params["bk"])
    v = lin(q, params["wv"], params["bv"])
    rs = lambda t: t.reshape(B, S, num_heads, D).transpose(0, 2, 1, 3)
    qh, kh, vh = rs(q), rs(k), rs(v)
    scores = jnp.einsum("bhqd,bhkd->bhqk", qh, kh) / math.sqrt(D)
    attn = jax.nn.softmax(scores, axis=-1)
    out = jnp.einsum("bhqk,bhkd->bhqd", attn, vh)
    out = out.transpose(0, 2, 1, 3).reshape(B, S, E)
    return lin(out, params["wo"], params["bo"])


if __name__ == "__main__":
    # Small shapes consistent with the module: (batch=2, seq=8, embed=64), 8 heads
    # (head_dim=8 keeps per-head row groups aligned to the sublane tile).
    B, S, E = 2, 8, 64
    num_heads = 8

    key = jax.random.PRNGKey(0)
    keys = jax.random.split(key, 9)
    bound = 1.0 / math.sqrt(E)  # torch.nn.Linear default init range

    params = {
        "wq": jax.random.uniform(keys[0], (E, E), jnp.float32, -bound, bound),
        "bq": jax.random.uniform(keys[1], (E,),   jnp.float32, -bound, bound),
        "wk": jax.random.uniform(keys[2], (E, E), jnp.float32, -bound, bound),
        "bk": jax.random.uniform(keys[3], (E,),   jnp.float32, -bound, bound),
        "wv": jax.random.uniform(keys[4], (E, E), jnp.float32, -bound, bound),
        "bv": jax.random.uniform(keys[5], (E,),   jnp.float32, -bound, bound),
        "wo": jax.random.uniform(keys[6], (E, E), jnp.float32, -bound, bound),
        "bo": jax.random.uniform(keys[7], (E,),   jnp.float32, -bound, bound),
    }
    x = jax.random.normal(keys[8], (B, S, E), jnp.float32)

    out = multi_head_attention(x, params, num_heads=num_heads)
    out = jax.block_until_ready(out)

    ref = _reference(x, params, num_heads=num_heads)
    assert out.shape == (B, S, E)
    # Tolerance accounts for bf16 matmul operands (f32 accumulation) and the
    # approximate-reciprocal softmax denominator vs. the f32 reference.
    assert jnp.allclose(out, ref, atol=3e-2, rtol=3e-2), (
        "mismatch vs reference, max abs err = %f" % float(jnp.max(jnp.abs(out - ref))))

    print("KERNEL_OK")
</pallas_src>

<mosaic_0001>
module attributes {stable_mosaic.version = 11 : i64} {
  func.func @_mha_kernel(%arg0: i32, %arg1: memref<1x8x64xbf16, #tpu.memory_space<vmem>>, %arg2: memref<64x64xbf16, #tpu.memory_space<vmem>>, %arg3: memref<1x64xf32, #tpu.memory_space<vmem>>, %arg4: memref<64x128xbf16, #tpu.memory_space<vmem>>, %arg5: memref<1x128xf32, #tpu.memory_space<vmem>>, %arg6: memref<64x64xbf16, #tpu.memory_space<vmem>>, %arg7: memref<1x64xf32, #tpu.memory_space<vmem>>, %arg8: memref<1x8x64xf32, #tpu.memory_space<vmem>>) attributes {dimension_semantics = [#tpu.dimension_semantics<parallel>], iteration_bounds = array<i64: 2>, scalar_prefetch = 0 : i64, scratch_operands = 0 : i64, tpu.core_type = #tpu.core_type<tc>, window_params = [{transform_indices = @transform_0, window_bounds = array<i64: 1, 8, 64>}, {pipeline_mode = #tpu.pipeline_mode<synchronous>, transform_indices = @transform_1, window_bounds = array<i64: 64, 64>}, {pipeline_mode = #tpu.pipeline_mode<synchronous>, transform_indices = @transform_2, window_bounds = array<i64: 1, 64>}, {pipeline_mode = #tpu.pipeline_mode<synchronous>, transform_indices = @transform_3, window_bounds = array<i64: 64, 128>}, {pipeline_mode = #tpu.pipeline_mode<synchronous>, transform_indices = @transform_4, window_bounds = array<i64: 1, 128>}, {pipeline_mode = #tpu.pipeline_mode<synchronous>, transform_indices = @transform_5, window_bounds = array<i64: 64, 64>}, {pipeline_mode = #tpu.pipeline_mode<synchronous>, transform_indices = @transform_6, window_bounds = array<i64: 1, 64>}, {transform_indices = @transform_7, window_bounds = array<i64: 1, 8, 64>}]} {
    %c0 = arith.constant 0 : index
    %c0_0 = arith.constant 0 : index
    %c0_1 = arith.constant 0 : index
    %0 = vector.load %arg1[%c0, %c0_0, %c0_1] : memref<1x8x64xbf16, #tpu.memory_space<vmem>>, vector<1x8x64xbf16>
    %1 = vector.shape_cast %0 : vector<1x8x64xbf16> to vector<8x64xbf16>
    %c0_2 = arith.constant 0 : index
    %c0_3 = arith.constant 0 : index
    %2 = vector.load %arg2[%c0_2, %c0_3] : memref<64x64xbf16, #tpu.memory_space<vmem>>, vector<64x64xbf16>
    %cst = arith.constant dense<0.000000e+00> : vector<8x64xf32>
    %3 = tpu.matmul %1, %2, %cst {dimension_numbers = #tpu.dot_dimension_numbers<[1], [0], [0], [1], [0, 0, 1, 1], [], []>} : vector<8x64xbf16>, vector<64x64xbf16>, vector<8x64xf32> -> vector<8x64xf32>
    %c0_4 = arith.constant 0 : index
    %c0_5 = arith.constant 0 : index
    %4 = vector.load %arg3[%c0_4, %c0_5] : memref<1x64xf32, #tpu.memory_space<vmem>>, vector<1x64xf32>
    %5 = vector.broadcast %4 : vector<1x64xf32> to vector<8x64xf32>
    %6 = arith.addf %3, %5 : vector<8x64xf32>
    %7 = arith.truncf %6 : vector<8x64xf32> to vector<8x64xbf16>
    %c0_6 = arith.constant 0 : index
    %c0_7 = arith.constant 0 : index
    %8 = vector.load %arg4[%c0_6, %c0_7] : memref<64x128xbf16, #tpu.memory_space<vmem>>, vector<64x128xbf16>
    %cst_8 = arith.constant dense<0.000000e+00> : vector<8x128xf32>
    %9 = tpu.matmul %7, %8, %cst_8 {dimension_numbers = #tpu.dot_dimension_numbers<[1], [0], [0], [1], [0, 0, 1, 1], [], []>} : vector<8x64xbf16>, vector<64x128xbf16>, vector<8x128xf32> -> vector<8x128xf32>
    %c0_9 = arith.constant 0 : index
    %c0_10 = arith.constant 0 : index
    %10 = vector.load %arg5[%c0_9, %c0_10] : memref<1x128xf32, #tpu.memory_space<vmem>>, vector<1x128xf32>
    %11 = vector.broadcast %10 : vector<1x128xf32> to vector<8x128xf32>
    %12 = arith.addf %9, %11 : vector<8x128xf32>
    %cst_11 = arith.constant 0.353553385 : f32
    %13 = vector.broadcast %cst_11 : f32 to vector<8x64xf32>
    %14 = arith.mulf %6, %13 : vector<8x64xf32>
    %15 = tpu.transpose %14, [1, 0] : vector<8x64xf32> -> vector<64x8xf32>
    %16 = vector.shape_cast %15 : vector<64x8xf32> to vector<8x8x8xf32>
    %17 = tpu.transpose %16, [0, 2, 1] : vector<8x8x8xf32> -> vector<8x8x8xf32>
    %18 = arith.truncf %17 : vector<8x8x8xf32> to vector<8x8x8xbf16>
    %19 = tpu.transpose %12, [1, 0] : vector<8x128xf32> -> vector<128x8xf32>
    %20 = vector.shape_cast %19 : vector<128x8xf32> to vector<16x8x8xf32>
    %21 = vector.extract_strided_slice %20 {offsets = [0, 0, 0], sizes = [8, 8, 8], strides = [1, 1, 1]} : vector<16x8x8xf32> to vector<8x8x8xf32>
    %22 = arith.truncf %21 : vector<8x8x8xf32> to vector<8x8x8xbf16>
    %23 = vector.extract_strided_slice %20 {offsets = [8, 0, 0], sizes = [8, 8, 8], strides = [1, 1, 1]} : vector<16x8x8xf32> to vector<8x8x8xf32>
    %24 = arith.truncf %23 : vector<8x8x8xf32> to vector<8x8x8xbf16>
    "tpu.trace_start"() <{level = 10 : i32, message = "hqd,hdk->hqk"}> : () -> ()
    %cst_12 = arith.constant dense<0.000000e+00> : vector<8x8x8xf32>
    %25 = tpu.matmul %18, %22, %cst_12 {dimension_numbers = #tpu.dot_dimension_numbers<[2], [1], [1], [2], [0, 0, 0, 1, 1, 2], [0], [0]>} : vector<8x8x8xbf16>, vector<8x8x8xbf16>, vector<8x8x8xf32> -> vector<8x8x8xf32>
    "tpu.trace_stop"() : () -> ()
    %cst_13 = arith.constant dense<0xFF800000> : vector<8x8xf32>
    %26 = vector.multi_reduction <maximumf>, %25, %cst_13 [2] : vector<8x8x8xf32> to vector<8x8xf32>
    %27 = vector.shape_cast %26 : vector<8x8xf32> to vector<8x8x1xf32>
    %28 = vector.broadcast %27 : vector<8x8x1xf32> to vector<8x8x8xf32>
    %29 = arith.subf %25, %28 : vector<8x8x8xf32>
    %30 = math.exp %29 : vector<8x8x8xf32>
    %cst_14 = arith.constant dense<0.000000e+00> : vector<8x8xf32>
    %31 = vector.multi_reduction <add>, %30, %cst_14 [2] : vector<8x8x8xf32> to vector<8x8xf32>
    %32 = vector.shape_cast %31 : vector<8x8xf32> to vector<8x8x1xf32>
    %33 = tpu.reciprocal %32 {approx = true} : vector<8x8x1xf32> -> vector<8x8x1xf32>
    %34 = vector.broadcast %33 : vector<8x8x1xf32> to vector<8x8x8xf32>
    %35 = arith.mulf %30, %34 : vector<8x8x8xf32>
    %36 = arith.truncf %35 : vector<8x8x8xf32> to vector<8x8x8xbf16>
    "tpu.trace_start"() <{level = 10 : i32, message = "hdk,hqk->hdq"}> : () -> ()
    %cst_15 = arith.constant dense<0.000000e+00> : vector<8x8x8xf32>
    %37 = tpu.matmul %24, %36, %cst_15 {dimension_numbers = #tpu.dot_dimension_numbers<[2], [2], [1], [1], [0, 0, 0, 1, 1, 1], [0], [0]>} : vector<8x8x8xbf16>, vector<8x8x8xbf16>, vector<8x8x8xf32> -> vector<8x8x8xf32>
    "tpu.trace_stop"() : () -> ()
    %38 = vector.shape_cast %37 : vector<8x8x8xf32> to vector<64x8xf32>
    %39 = tpu.transpose %38, [1, 0] : vector<64x8xf32> -> vector<8x64xf32>
    %40 = arith.truncf %39 : vector<8x64xf32> to vector<8x64xbf16>
    %c0_16 = arith.constant 0 : index
    %c0_17 = arith.constant 0 : index
    %41 = vector.load %arg6[%c0_16, %c0_17] : memref<64x64xbf16, #tpu.memory_space<vmem>>, vector<64x64xbf16>
    %cst_18 = arith.constant dense<0.000000e+00> : vector<8x64xf32>
    %42 = tpu.matmul %40, %41, %cst_18 {dimension_numbers = #tpu.dot_dimension_numbers<[1], [0], [0], [1], [0, 0, 1, 1], [], []>} : vector<8x64xbf16>, vector<64x64xbf16>, vector<8x64xf32> -> vector<8x64xf32>
    %c0_19 = arith.constant 0 : index
    %c0_20 = arith.constant 0 : index
    %43 = vector.load %arg7[%c0_19, %c0_20] : memref<1x64xf32, #tpu.memory_space<vmem>>, vector<1x64xf32>
    %44 = vector.broadcast %43 : vector<1x64xf32> to vector<8x64xf32>
    %45 = arith.addf %42, %44 : vector<8x64xf32>
    %c0_21 = arith.constant 0 : index
    %c0_22 = arith.constant 0 : index
    %c0_23 = arith.constant 0 : index
    %46 = vector.load %arg8[%c0_21, %c0_22, %c0_23] : memref<1x8x64xf32, #tpu.memory_space<vmem>>, vector<1x8x64xf32>
    %47 = vector.shape_cast %46 : vector<1x8x64xf32> to vector<8x64xf32>
    %48 = vector.shape_cast %45 : vector<8x64xf32> to vector<1x8x64xf32>
    tpu.vector_store %arg8[%c0_21, %c0_22, %c0_23], %48 {strides = array<i32>} : memref<1x8x64xf32, #tpu.memory_space<vmem>>, vector<1x8x64xf32>,
    return
  }
  func.func @transform_0(%arg0: i32) -> (i32, i32, i32) {
    %c0_i32 = arith.constant 0 : i32
    %c0_i32_0 = arith.constant 0 : i32
    %c0_i32_1 = arith.constant 0 : i32
    return %arg0, %c0_i32, %c0_i32_0 : i32, i32, i32
  }
  func.func @transform_1(%arg0: i32) -> (i32, i32) {
    %c0_i32 = arith.constant 0 : i32
    %c0_i32_0 = arith.constant 0 : i32
    %c0_i32_1 = arith.constant 0 : i32
    return %c0_i32, %c0_i32_0 : i32, i32
  }
  func.func @transform_2(%arg0: i32) -> (i32, i32) {
    %c0_i32 = arith.constant 0 : i32
    %c0_i32_0 = arith.constant 0 : i32
    %c0_i32_1 = arith.constant 0 : i32
    return %c0_i32, %c0_i32_0 : i32, i32
  }
  func.func @transform_3(%arg0: i32) -> (i32, i32) {
    %c0_i32 = arith.constant 0 : i32
    %c0_i32_0 = arith.constant 0 : i32
    %c0_i32_1 = arith.constant 0 : i32
    return %c0_i32, %c0_i32_0 : i32, i32
  }
  func.func @transform_4(%arg0: i32) -> (i32, i32) {
    %c0_i32 = arith.constant 0 : i32
    %c0_i32_0 = arith.constant 0 : i32
    %c0_i32_1 = arith.constant 0 : i32
    return %c0_i32, %c0_i32_0 : i32, i32
  }
  func.func @transform_5(%arg0: i32) -> (i32, i32) {
    %c0_i32 = arith.constant 0 : i32
    %c0_i32_0 = arith.constant 0 : i32
    %c0_i32_1 = arith.constant 0 : i32
    return %c0_i32, %c0_i32_0 : i32, i32
  }
  func.func @transform_6(%arg0: i32) -> (i32, i32) {
    %c0_i32 = arith.constant 0 : i32
    %c0_i32_0 = arith.constant 0 : i32
    %c0_i32_1 = arith.constant 0 : i32
    return %c0_i32, %c0_i32_0 : i32, i32
  }
  func.func @transform_7(%arg0: i32) -> (i32, i32, i32) {
    %c0_i32 = arith.constant 0 : i32
    %c0_i32_0 = arith.constant 0 : i32
    %c0_i32_1 = arith.constant 0 : i32
    return %arg0, %c0_i32, %c0_i32_0 : i32, i32, i32
  }
}

</mosaic_0001>

<bundles_post_ra>
// kernel: tpu_custom_call.1
= control target key start
LH: loop header
LB: loop body
LE: loop exit
PB: predicated region body
PF: predicated region fallthrough
CT: control target
= control target key end

     0   :  { %12 = vsyncpa [#allocation3], 0  ;;  %s3192_s0 = inlined_call_operand.hbm [shape: bf16[2,8,64], index: 0, kind: input, shape index: {}]   ;;  %s3193_s1 = inlined_call_operand.hbm [shape: bf16[64,64], index: 1, kind: input, shape index: {}]   ;;  %s3194_s2 = inlined_call_operand.hbm [shape: f32[1,64], index: 2, kind: input, shape index: {}]   ;;  %s3195_s3 = inlined_call_operand.hbm [shape: bf16[64,128], index: 3, kind: input, shape index: {}]   ;;  %s3196_s4 = inlined_call_operand.hbm [shape: f32[1,128], index: 4, kind: input, shape index: {}]   ;;  %s3197_s5 = inlined_call_operand.hbm [shape: bf16[64,64], index: 5, kind: input, shape index: {}]   ;;  %s3198_s6 = inlined_call_operand.hbm [shape: f32[1,64], index: 6, kind: input, shape index: {}]   ;;  %s3199_s7 = inlined_call_operand.hbm [shape: f32[2,8,64], index: 7, kind: output, shape index: {}]  }
   0x1   :  { %14 = vsyncpa [#allocation3 + $0x1], 0 }
   0x2   :  { %15 = vsyncpa [#allocation6], 0 }
   0x3   :  { %16 = vsyncpa [#allocation9], 0 }
   0x4   :  { %17 = vsyncpa [#allocation12], 0 }
   0x5   :  { %18 = vsyncpa [#allocation4], 0 }
   0x6   :  { %20 = vsyncpa [#allocation4 + $0x1], 0  ;;  %s2701_s24 = smov 0   ;;  %s2703_s25 = smov 0  }
   0x7   :  { %s2705_s26 = smov 0   ;;  %s2707_s27 = smov 0  }
   0x8 LB: > { %s2649_s28 = smov [#allocation5]   ;;  %s2722_s30 = sadd.s32 4294967295, %s2647_s27   ;;  %s2647_s27 = sphi %s2707_s27, %s3225_s27   ;;  %s2643_s26 = sphi %s2705_s26, %s3224_s26   ;;  %s2639_s25 = sphi %s2703_s25, %s3223_s25   ;;  %s2635_s24 = sphi %s2701_s24, %s3222_s24  }
   0x9   : > { %s221_s29 = sshll.u32 %s2649_s28, 4  ;;  %p1980_p0 = scmp.ge.s32.totalorder %s2647_s27, 1  ;;  %s2727_s29 = int_to_ptr.vmem [resolvable:$true] %s221_s29 }
   0xa   : > { %p3200_p1 = scmp.eq.s32.totalorder %s2722_s30, 0  ;;  %p209_p2 = scmp.lt.s32.totalorder %s2647_s27, 3 }
   0xb   : > { %s2650_s9 = smov [#allocation8]   ;;  %s2651_s12 = smov [#allocation11]  }
   0xc   : > { %p2729_p3 = pnand %p1980_p0, %p209_p2  ;;  %s245_s10 = sshll.u32 %s2650_s9, 4  ;;  %s2742_s10 = int_to_ptr.vmem [resolvable:$true] %s245_s10 }
   0xd   : > { %s269_s13 = sshll.u32 %s2651_s12, 4  ;;  %s2371_s16 = scalar_lea.hbm %s3193_s1, 512  ;;  %s2744_s13 = int_to_ptr.vmem [resolvable:$true] %s269_s13 }
   0xe   : > { %s3203_s8 = scalar_select %p2729_p3, 1, 0 }
   0xf   : > { %p2244_p5 = pneg %p2729_p3  ;;  %p2372_p7 = scmp.ne.s32.totalorder %s3193_s1, %s2371_s16 }
  0x10   : > { %p2378_p11 = scmp.lt.u32.totalorder %s2371_s16, %s3193_s1 }
  0x11   : > { %p2738_p6 = pnand %p2244_p5, %p3200_p1 }
  0x13   : > { %p2754_p8 = pneg %p2738_p6 }
  0x15   : > { %p2374_p9 = pnand %p2754_p8, %p2372_p7 }
  0x17   : > { %p2375_p10 = pneg %p2374_p9 }
  0x19   : > { %p2380_p12 = pnand %p2378_p11, %p2375_p10 }
  0x1b   : > { %2383 = shalt.err (!%p2380_p12)
}
  0x1c   : > { %s2384_s22 = scalar_lea.vmem %s2727_s29, 512  ;;  %p2392_p5 = scmp.lt.s32.totalorder %s2727_s29, %s2727_s29 }
  0x1d   : > { %p2385_p13 = scmp.ne.s32.totalorder %s2727_s29, %s2384_s22  ;;  %p2393_p4 = scmp.lt.s32.totalorder %s2384_s22, %s2384_s22 }
  0x1f   : > { %p2387_p0 = pnand %p2385_p13, %p2754_p8  ;;  %p2394_p7 = por %p2393_p4, %p2392_p5 }
  0x21   : > { %p2388_p2 = pneg %p2387_p0 }
  0x23   : > { %p2395_p9 = pnand %p2394_p7, %p2388_p2 }
  0x25   : > { %2398 = shalt.err (!%p2395_p9)
}
  0x26   : > { %s2652_s23 = smov 64   ;;  %s2653_s28 = smov 4  }
  0x27   : > { %2247 = dma.hbm_to_vmem [thread:$0]  (!%p2738_p6), %s3193_s1, 512, %s2727_s29, [#allocation6], %s2652_s23, %s2652_s23, %s2653_s28  }
  0x28   : > { %s2399_s16 = scalar_lea.hbm %s3195_s3, 512 }
  0x29   : > { %p2400_p4 = scmp.ne.s32.totalorder %s3195_s3, %s2399_s16  ;;  %p2406_p12 = scmp.lt.u32.totalorder %s2399_s16, %s3195_s3 }
  0x2b   : > { %p2402_p10 = pnand %p2400_p4, %p2754_p8 }
  0x2d   : > { %p2403_p11 = pneg %p2402_p10 }
  0x2f   : > { %p2408_p13 = pnand %p2406_p12, %p2403_p11 }
  0x31   : > { %2411 = shalt.err (!%p2408_p13)
}
  0x32   : > { %s2412_s29 = scalar_lea.vmem %s2742_s10, 512  ;;  %p2420_p7 = scmp.lt.s32.totalorder %s2742_s10, %s2742_s10 }
  0x33   : > { %p2413_p0 = scmp.ne.s32.totalorder %s2742_s10, %s2412_s29  ;;  %p2421_p9 = scmp.lt.s32.totalorder %s2412_s29, %s2412_s29 }
  0x35   : > { %p2415_p2 = pnand %p2413_p0, %p2754_p8  ;;  %p2422_p4 = por %p2421_p9, %p2420_p7 }
  0x37   : > { %p2416_p5 = pneg %p2415_p2 }
  0x39   : > { %p2423_p10 = pnand %p2422_p4, %p2416_p5 }
  0x3b   : > { %2426 = shalt.err (!%p2423_p10)
}
  0x3c   : > { %2253 = dma.hbm_to_vmem [thread:$0]  (!%p2738_p6), %s3195_s3, 512, %s2742_s10, [#allocation9], %s2652_s23, %s2652_s23, %s2653_s28  }
  0x3d   : > { %s2427_s15 = scalar_lea.hbm %s3197_s5, 512 }
  0x3e   : > { %p2428_p11 = scmp.ne.s32.totalorder %s3197_s5, %s2427_s15  ;;  %p2434_p0 = scmp.lt.u32.totalorder %s2427_s15, %s3197_s5 }
  0x40   : > { %p2430_p12 = pnand %p2428_p11, %p2754_p8 }
  0x42   : > { %p2431_p13 = pneg %p2430_p12 }
  0x44   : > { %p2436_p2 = pnand %p2434_p0, %p2431_p13 }
  0x46   : > { %2439 = shalt.err (!%p2436_p2)
}
  0x47   : > { %s2440_s10 = scalar_lea.vmem %s2744_s13, 512  ;;  %p2448_p4 = scmp.lt.s32.totalorder %s2744_s13, %s2744_s13 }
  0x48   : > { %p2441_p5 = scmp.ne.s32.totalorder %s2744_s13, %s2440_s10  ;;  %p2449_p10 = scmp.lt.s32.totalorder %s2440_s10, %s2440_s10 }
  0x4a   : > { %p2443_p7 = pnand %p2441_p5, %p2754_p8  ;;  %p2450_p11 = por %p2449_p10, %p2448_p4 }
  0x4c   : > { %p2444_p9 = pneg %p2443_p7 }
  0x4e   : > { %p2451_p12 = pnand %p2450_p11, %p2444_p9 }
  0x50   : > { %2454 = shalt.err (!%p2451_p12)
}
  0x51   : > { %2259 = dma.hbm_to_vmem [thread:$0]  (!%p2738_p6), %s3197_s5, 512, %s2744_s13, [#allocation12], %s2652_s23, %s2652_s23, %s2653_s28  }
  0x52   : > { %s2654_s22 = smov [#allocation7]   ;;  %s2655_s12 = smov [#allocation10]  }
  0x53   : > { %s235_s9 = sshll.u32 %s2654_s22, 4  ;;  %s259_s14 = sshll.u32 %s2655_s12, 4  ;;  %s236_s9 = int_to_ptr.vmem [resolvable:$true] %s235_s9  ;;  %s260_s14 = int_to_ptr.vmem [resolvable:$true] %s259_s14 }
  0x54   : > { %s2455_s17 = scalar_lea.hbm %s3194_s2, 16 }
  0x55   : > { %p2456_p13 = scmp.ne.s32.totalorder %s3194_s2, %s2455_s17  ;;  %p2462_p5 = scmp.lt.u32.totalorder %s2455_s17, %s3194_s2 }
  0x57   : > { %p2458_p0 = pnand %p2456_p13, %p2754_p8 }
  0x59   : > { %p2459_p2 = pneg %p2458_p0 }
  0x5b   : > { %p2464_p7 = pnand %p2462_p5, %p2459_p2 }
  0x5d   : > { %2467 = shalt.err (!%p2464_p7)
}
  0x5e   : > { %s2468_s13 = scalar_lea.vmem %s236_s9, 16  ;;  %s2475_s23 = scalar_lea.vmem %s236_s9, 32 }
  0x5f   : > { %p2469_p9 = scmp.ne.s32.totalorder %s236_s9, %s2468_s13  ;;  %p2476_p11 = scmp.lt.s32.totalorder %s236_s9, %s236_s9 }
  0x60   : > { %p2477_p12 = scmp.lt.s32.totalorder %s2475_s23, %s2468_s13 }
  0x61   : > { %p2471_p4 = pnand %p2469_p9, %p2754_p8 }
  0x62   : > { %p2478_p1 = por %p2477_p12, %p2476_p11 }
  0x63   : > { %p2472_p10 = pneg %p2471_p4 }
  0x65   : > { %p2479_p3 = pnand %p2478_p1, %p2472_p10 }
  0x67   : > { %2482 = shalt.err (!%p2479_p3)
}
  0x68   : > { %2250 = dma.hbm_to_vmem [thread:$0]  (!%p2738_p6), %s3194_s2, 16, %s236_s9, [#allocation6]  }
  0x69   : > { %s2483_s15 = scalar_lea.hbm %s3196_s4, 16 }
  0x6a   : > { %p2484_p13 = scmp.ne.s32.totalorder %s3196_s4, %s2483_s15  ;;  %p2490_p3 = scmp.lt.u32.totalorder %s2483_s15, %s3196_s4 }
  0x6c   : > { %p2486_p0 = pnand %p2484_p13, %p2754_p8 }
  0x6e   : > { %p2487_p1 = pneg %p2486_p0 }
  0x70   : > { %p2492_p2 = pnand %p2490_p3, %p2487_p1 }
  0x72   : > { %2495 = shalt.err (!%p2492_p2)
}
  0x73   : > { %s2496_s10 = scalar_lea.vmem %s260_s14, 16  ;;  %s2503_s9 = scalar_lea.vmem %s260_s14, 32 }
  0x74   : > { %p2497_p5 = scmp.ne.s32.totalorder %s260_s14, %s2496_s10  ;;  %p2504_p4 = scmp.lt.s32.totalorder %s260_s14, %s260_s14 }
  0x75   : > { %p2505_p10 = scmp.lt.s32.totalorder %s2503_s9, %s2496_s10 }
  0x76   : > { %p2499_p7 = pnand %p2497_p5, %p2754_p8 }
  0x77   : > { %p2506_p11 = por %p2505_p10, %p2504_p4 }
  0x78   : > { %p2500_p9 = pneg %p2499_p7 }
  0x7a   : > { %p2507_p12 = pnand %p2506_p11, %p2500_p9 }
  0x7c   : > { %2510 = shalt.err (!%p2507_p12)
}
  0x7d   : > { %2256 = dma.hbm_to_vmem [thread:$0]  (!%p2738_p6), %s3196_s4, 16, %s260_s14, [#allocation9]  }
  0x7e   : > { %s2656_s23 = smov [#allocation13]   ;;  %s2511_s12 = scalar_lea.hbm %s3198_s6, 16 }
  0x7f   : > { %s283_s28 = sshll.u32 %s2656_s23, 4  ;;  %p2512_p13 = scmp.ne.s32.totalorder %s3198_s6, %s2511_s12  ;;  %s284_s28 = int_to_ptr.vmem [resolvable:$true] %s283_s28 }
  0x80   : > { %p2518_p3 = scmp.lt.u32.totalorder %s2511_s12, %s3198_s6 }
  0x81   : > { %p2514_p0 = pnand %p2512_p13, %p2754_p8 }
  0x83   : > { %p2515_p1 = pneg %p2514_p0 }
  0x85   : > { %p2520_p2 = pnand %p2518_p3, %p2515_p1 }
  0x87   : > { %2523 = shalt.err (!%p2520_p2)
}
  0x88   : > { %s2524_s14 = scalar_lea.vmem %s284_s28, 16  ;;  %s2531_s20 = scalar_lea.vmem %s284_s28, 32 }
  0x89   : > { %p2525_p5 = scmp.ne.s32.totalorder %s284_s28, %s2524_s14  ;;  %p2532_p4 = scmp.lt.s32.totalorder %s284_s28, %s284_s28 }
  0x8a   : > { %p2533_p10 = scmp.lt.s32.totalorder %s2531_s20, %s2524_s14 }
  0x8b   : > { %p2527_p7 = pnand %p2525_p5, %p2754_p8 }
  0x8c   : > { %p2534_p11 = por %p2533_p10, %p2532_p4 }
  0x8d   : > { %p2528_p9 = pneg %p2527_p7 }
  0x8f   : > { %p2535_p12 = pnand %p2534_p11, %p2528_p9 }
  0x91   : > { %2538 = shalt.err (!%p2535_p12)
}
  0x92   : > { %2262 = dma.hbm_to_vmem [thread:$0]  (!%p2738_p6), %s3198_s6, 16, %s284_s28, [#allocation12]  }
  0x93   : > { %s1979_s19 = sadd.s32 4294967294, %s2647_s27   ;;  %s2886_s11 = sadd.s32 1, %s2647_s27  }
  0x94   : > { %s30_s21 = ssub.s32 %s2647_s27, %s2886_s11  ;;  %s33_s13 = sadd.s32 1, %s2643_s26 }
  0x95   : > { %p31_p8 = scmp.eq.s32.totalorder %s30_s21, 0  ;;  %p40_p13 = scmp.ne.s32.totalorder %s2643_s26, %s2639_s25 }
  0x96   : > { %p41_p0 = scmp.eq.s32.totalorder %s2647_s27, 0  ;;  %p46_p1 = scmp.ne.s32.totalorder %s2639_s25, %s2635_s24 }
  0x97   : > { %s2897_s23 = scalar_select %p31_p8, %s2643_s26, %s33_s13  }
  0x98   : > { %p2899_p3 = por %p41_p0, %p40_p13  ;;  %p3207_p2 = scmp.eq.s32.totalorder %s2722_s30, 0 }
  0x99   : > { %p196_p5 = scmp.eq.s32.totalorder %s2722_s30, 1  ;;  %p202_p7 = scmp.eq.s32.totalorder %s1979_s19, 1 }
  0x9a   : > { %p2905_p6 = por %p3207_p2, %p46_p1  ;;  %p2277_p9 = scmp.lt.s32.totalorder %s2647_s27, 2 }
  0x9b   : > { %s294_s22 = sand.u32 1, %s2643_s26   ;;  %p2912_p4 = por %p196_p5, %p40_p13 }
  0x9c   : > { %p2916_p10 = por %p202_p7, %p46_p1  ;;  %s1988_s16 = sshll.u32 %s294_s22, 2 }
  0x9d   : > { %s3209_s12 = scalar_select %p2912_p4, 1, 0 }
  0x9e   : > { %s3210_s15 = scalar_select %p2916_p10, 1, 0 }
  0x9f   : > { %s1989_s17 = sshll.u32 %s2647_s27, 6  ;;  %s298_s10 = scalar_lea.vmem [#allocation2], %s1988_s16 }
  0xa0   : > { %s2924_s20 = scalar_lea.hbm %s3192_s0, %s1989_s17  ;;  %s305_s9 = sshll.u32 %s298_s10, 4  ;;  %s2926_s9 = int_to_ptr.vmem [resolvable:$true] %s305_s9 }
  0xa1   : > { %p2930_p11 = pnand %p2277_p9, %p2899_p3  ;;  %s295_s21 = scalar_lea.sflag [#allocation3], %s294_s22 }
  0xa2   : > { %s2539_s13 = scalar_lea.hbm %s2924_s20, 64  ;;  %s2544_s18 = scalar_lea.hbm %s3192_s0, 128 }
  0xa3   : > { %p2540_p12 = scmp.ne.s32.totalorder %s2924_s20, %s2539_s13  ;;  %p2541_p8 = pneg %p2930_p11 }
  0xa4   : > { %p2545_p1 = scmp.lt.u32.totalorder %s2924_s20, %s3192_s0  ;;  %p2546_p3 = scmp.lt.u32.totalorder %s2544_s18, %s2539_s13 }
  0xa5   : > { %p2542_p13 = pnand %p2541_p8, %p2540_p12  ;;  %p2548_p5 = scmp.lt.u32.totalorder %s2539_s13, %s2924_s20 }
  0xa6   : > { %p2547_p2 = por %p2546_p3, %p2545_p1 }
  0xa7   : > { %p2543_p0 = pneg %p2542_p13 }
  0xa8   : > { %p2549_p7 = por %p2548_p5, %p2547_p2 }
  0xaa   : > { %p2550_p9 = pnand %p2549_p7, %p2543_p0 }
  0xac   : > { %2553 = shalt.err (!%p2550_p9)
}
  0xad   : > { %s2554_s22 = scalar_lea.vmem %s2926_s9, 64  ;;  %s2657_s10 = smov [#allocation2]  }
  0xae   : > { %p2555_p12 = scmp.ne.s32.totalorder %s2926_s9, %s2554_s22  ;;  %s2559_s16 = sshll.u32 %s2657_s10, 4  ;;  %s2560_s16 = int_to_ptr.vmem [resolvable:$false] %s2559_s16 }
  0xaf   : > { %s2561_s17 = scalar_lea.vmem %s2560_s16, 128  ;;  %p2562_p4 = scmp.lt.s32.totalorder %s2926_s9, %s2560_s16 }
  0xb0   : > { %p2557_p13 = pnand %p2555_p12, %p2541_p8  ;;  %p2563_p1 = scmp.lt.s32.totalorder %s2561_s17, %s2554_s22 }
  0xb2   : > { %p2558_p10 = pneg %p2557_p13  ;;  %p2564_p3 = por %p2563_p1, %p2562_p4 }
  0xb4   : > { %p2565_p2 = pnand %p2564_p3, %p2558_p10 }
  0xb6   : > { %2568 = shalt.err (!%p2565_p2)
}
  0xb7   : > { %2266 = dma.hbm_to_vmem [thread:$0]  (!%p2930_p11), %s2924_s20, 64, %s2926_s9, %s295_s21  }
  0xb8   : > { %p3212_p0 = scmp.ne.s32.totalorder %s3203_s8, 0 }
  0xb9   : > { %s2962_s13 = sand.u32 (!%p3212_p0), 1, %s2639_s25  }
  0xba   : > { %314 = sbr.rel (%p3212_p0) target bundleno = 1897 (0x769), region = 48  ;;  %s1991_s18 = sshll.u32 (!%p3212_p0), %s2962_s13, 2 }
  0xbb   : > { %s317_s29 = scalar_lea.sflag (!%p3212_p0), [#allocation3], %s2962_s13  ;;  %s2966_s14 = scalar_lea.vmem (!%p3212_p0), [#allocation2], %s1991_s18 }
  0xc1   : > { %2614 = dma.done.wait (%p2905_p6), %s317_s29, 64  }
  0xc2   : > { %2616 = vsyncadd (%p2905_p6), %s317_s29, 4294967232  ;;  %p3213_p4 = scmp.eq.s32.totalorder %s2722_s30, 0 }
  0xc4   : > { %2618 = dma.done.wait (%p3213_p4), [#allocation6], 528   ;;  %p3214_p10 = pmov %p3213_p4 }
  0xc5   : > { %p3215_p11 = pmov %p3213_p4 }
  0xc6   : > { %2620 = vsyncadd (%p3214_p10), [#allocation6], 4294966768 }
  0xc7   : > { %2622 = dma.done.wait (%p3215_p11), [#allocation9], 528   ;;  %p3216_p8 = pmov %p3213_p4 }
  0xc8   : > { %p3217_p5 = pmov %p3213_p4 }
  0xc9   : > { %2624 = vsyncadd (%p3216_p8), [#allocation9], 4294966768 }
  0xca   : > { %2626 = dma.done.wait (%p3217_p5), [#allocation12], 528   ;;  %p3218_p7 = pmov %p3213_p4 }
  0xcb   : > { %v2658_v0 = vmov 0.0   ;;  %vm2659_vm0 = vmmov 0   ;;  %v2327_v1 = vld [vmem:[#allocation5] sm:$0xff]   ;;  %v2328_v2 = vld [vmem:[#allocation5 + $0x8] sm:$0xff]   ;;  %v2329_v4 = vld [vmem:[#allocation5 + $0x10] sm:$0xff]   ;;  %vm416_vm1 = vcmask 523264  }
  0xcc   : > { %2628 = vsyncadd (%p3218_p7), [#allocation12], 4294966768  ;;  %2084 = vmatprep.subr.bf16.mxu0 %v2658_v0  ;;  %2092 = vmatprep.mubr.msk.bf16.mxu0 %vm2659_vm0, %v2658_v0  ;;  %v2331_v3 = vld [vmem:[#allocation8] sm:$0xff]   ;;  %v2332_v5 = vld [vmem:[#allocation8 + $0x8] sm:$0xff]   ;;  %vm892_vm2 = vcmask 1043456   ;;  %vm888_vm3 = vcmask 64512  }
  0xcd   : > { %2096 = vmatprep.subr.bf16.mxu1 %v2658_v0  ;;  %2104 = vmatprep.mubr.msk.bf16.mxu1 %vm2659_vm0, %v2658_v0  ;;  %v2330_v6 = vld [vmem:[#allocation5 + $0x18] sm:$0xff]   ;;  %v1999_v10 = vld [vmem:[#allocation7] ss:$0 sm:$0xff]  ;;  %v2005_v26 = vld [vmem:[#allocation10] ss:$0 sm:$0xff]  ;;  %s1998_s8 = sshll.u32 %s2962_s13, 3 }
  0xce   : > { %2085 = vmatpush3.bf16.msra.mxu0 %v2327_v1  ;;  %2097 = vmatpush3.bf16.msra.mxu1 %v2331_v3  ;;  %v2333_v7 = vld [vmem:[#allocation8 + $0x10] sm:$0xff]   ;;  %v2334_v9 = vld [vmem:[#allocation8 + $0x18] sm:$0xff]   ;;  %s2034_s28 = sshll.u32 %s2722_s30, 7  ;;  %s374_s20 = scalar_lea.vmem [#allocation14], %s1998_s8 }
  0xcf   : > { %2086 = vmatprep.subr.bf16.mxu0 %v2658_v0  ;;  %2098 = vmatprep.subr.bf16.mxu1 %v2658_v0  ;;  %v376_v8 = vld [vmem:[%s2966_s14] sm:$0xf]  ;;  %s1852_s9 = sshll.u32 %s374_s20, 4  ;;  %s3147_s22 = scalar_lea.hbm %s3199_s7, %s2034_s28  ;;  %s3149_s9 = int_to_ptr.vmem [resolvable:$true] %s1852_s9 }
  0xd0   : > { %s1839_s30 = scalar_lea.sflag [#allocation4], %s2962_s13  ;;  %s2569_s10 = scalar_lea.vmem %s3149_s9, 128 }
  0xd1   : > { %p2570_p6 = scmp.ne.s32.totalorder %s3149_s9, %s2569_s10  ;;  %p3219_p9 = scmp.ne.s32.totalorder %s3209_s12, 0 }
  0xd2   : > { %2087 = vmatpush3.bf16.msra.mxu0 %v2328_v2  ;;  %2099 = vmatpush3.bf16.msra.mxu1 %v2332_v5  ;;  %s2660_s16 = smov [#allocation14]  }
  0xd3   : > { %2088 = vmatprep.subr.bf16.mxu0 %v2658_v0  ;;  %2100 = vmatprep.subr.bf16.mxu1 %v2658_v0  ;;  %p2571_p12 = pnand %p2570_p6, %p3219_p9  ;;  %s2573_s17 = sshll.u32 %s2660_s16, 4  ;;  %s2574_s17 = int_to_ptr.vmem [resolvable:$false] %s2573_s17 }
  0xd4   : > { %s2575_s18 = scalar_lea.vmem %s2574_s17, 256  ;;  %p2576_p1 = scmp.lt.s32.totalorder %s3149_s9, %s2574_s17 }
  0xd5   : > { %p2572_p13 = pneg %p2571_p12  ;;  %p2577_p3 = scmp.lt.s32.totalorder %s2575_s18, %s2569_s10 }
  0xd6   : > { %2089 = vmatpush3.bf16.msra.mxu0 %v2329_v4  ;;  %2101 = vmatpush3.bf16.msra.mxu1 %v2333_v7 }
  0xd7   : > { %2090 = vmatprep.subr.bf16.mxu0 %v2658_v0  ;;  %2102 = vmatprep.subr.bf16.mxu1 %v2658_v0  ;;  %p2578_p2 = por %p2577_p3, %p2576_p1 }
  0xd9   : > { %p2579_p0 = pnand %p2578_p2, %p2572_p13 }
  0xda   : > { %2091 = vmatpush3.bf16.msra.mxu0 %v2330_v6  ;;  %2103 = vmatpush3.bf16.msra.mxu1 %v2334_v9 }
  0xdb   : > { %2120 = vmatprep.subr.bf16.mxu0 %v2658_v0  ;;  %2108 = vmatprep.subr.bf16.mxu1 %v2658_v0 }
  0xdd   : > { %2093 = vmatmul.mubr.msk.bf16.vlgmr.msra.gmra.mrb[0].mxu0 %vm416_vm1, %v376_v8 }
  0xde   : > { %2122 = vmatprep.mubr.msk.bf16.mxu0 %vm2659_vm0, %v2658_v0 }
 0x1b0   : > { %v454_v11 = vpop.f32.mrb[0].mxu0 }
 0x1b1   : > { %v455_v12 = vadd.f32 %v1999_v10, %v454_v11  ;;  %v2094_v13 = vpop.f32.mrb[1].mxu0 }
 0x1b2   : > { %v457_v14 = vpop.f32.mrb[2].mxu0 }
 0x1b3   : > { %v460_v15 = vpack.c.bf16 %v455_v12, %v455_v12  ;;  %v2095_v16 = vpop.f32.mrb[3].mxu0  ;;  %v543_v17 = vmul.f32 0.35355338, %v455_v12 }
 0x1b5   : > { %544 = vxpose.xlu0.b32.start.end [1/1] (short) (narrow) %v543_v17, 64  ;;  %2105 = vmatmul.mubr.msk.bf16.vlgmr.msra.gmra.mrb[0].mxu1 %vm416_vm1, %v460_v15 }
 0x1b6   : > { %2110 = vmatprep.mubr.msk.bf16.mxu1 %vm2659_vm0, %v2658_v0 }
 0x235   : > { %v560_v18 = vpop.trf.xlu0 }
 0x236   : > { %576 = vxpose.xlu1.b32.start.end [1/1] (short) (narrow) %v560_v18, 8 }
 0x239   : > { %v561_v19 = vpop.trf.xlu0 }
 0x23a   : > { %608 = vxpose.xlu1.b32.start.end [1/1] (short) (narrow) %v561_v19, 8 }
 0x23d   : > { %v562_v20 = vpop.trf.xlu0 }
 0x23e   : > { %640 = vxpose.xlu1.b32.start.end [1/1] (short) (narrow) %v562_v20, 8 }
 0x241   : > { %v563_v21 = vpop.trf.xlu0 }
 0x242   : > { %672 = vxpose.xlu1.b32.start.end [1/1] (short) (narrow) %v563_v21, 8 }
 0x245   : > { %v564_v22 = vpop.trf.xlu0 }
 0x246   : > { %704 = vxpose.xlu1.b32.start.end [1/1] (short) (narrow) %v564_v22, 8 }
 0x249   : > { %v565_v23 = vpop.trf.xlu0 }
 0x24a   : > { %736 = vxpose.xlu1.b32.start.end [1/1] (short) (narrow) %v565_v23, 8 }
 0x24d   : > { %v566_v24 = vpop.trf.xlu0 }
 0x24e   : > { %768 = vxpose.xlu1.b32.start.end [1/1] (short) (narrow) %v566_v24, 8 }
 0x251   : > { %v567_v25 = vpop.trf.xlu0 }
 0x252   : > { %800 = vxpose.xlu1.b32.start.end [1/1] (short) (narrow) %v567_v25, 8 }
 0x288   : > { %v537_v27 = vpop.f32.mrb[0].mxu1 }
 0x289   : > { %v538_v28 = vadd.f32 %v2005_v26, %v537_v27  ;;  %v2106_v29 = vpop.f32.mrb[1].mxu1 }
 0x28a   : > { %v540_v30 = vpop.f32.mrb[2].mxu1 }
 0x28b   : > { %840 = vxpose.xlu0.b32.start.end [1/1] (short) %v538_v28, 128  ;;  %v2107_v31 = vpop.f32.mrb[3].mxu1 }
 0x2b6   : > { %v592_v32 = vpop.trf.xlu1 }
 0x2b7   : > { %v832_v38 = vpack.c.bf16 %v592_v32, %v592_v32 }
 0x2ba   : > { %v624_v33 = vpop.trf.xlu1 }
 0x2bb   : > { %v833_v45 = vpack.c.bf16 %v624_v33, %v624_v33 }
 0x2be   : > { %v656_v35 = vpop.trf.xlu1 }
 0x2bf   : > { %v834_v47 = vpack.c.bf16 %v656_v35, %v656_v35 }
 0x2c2   : > { %v688_v41 = vpop.trf.xlu1 }
 0x2c3   : > { %v835_v55 = vpack.c.bf16 %v688_v41, %v688_v41 }
 0x2c6   : > { %v720_v49 = vpop.trf.xlu1 }
 0x2c7   : > { %v836_v57 = vpack.c.bf16 %v720_v49, %v720_v49 }
 0x2ca   : > { %v752_v54 = vpop.trf.xlu1 }
 0x2cb   : > { %v837_v1 = vpack.c.bf16 %v752_v54, %v752_v54 }
 0x2ce   : > { %v784_v62 = vpop.trf.xlu1 }
 0x2cf   : > { %v838_v3 = vpack.c.bf16 %v784_v62, %v784_v62 }
 0x2d2   : > { %v816_v7 = vpop.trf.xlu1 }
 0x2d3   : > { %v839_v8 = vpack.c.bf16 %v816_v7, %v816_v7 }
 0x30b   : > { %v856_v34 = vpop.trf.xlu0 }
 0x30c   : > { %v872_v36 = vpack.c.bf16 %v856_v34, %v856_v34 }
 0x30e   : > { %v894_v37 = vsel %vm892_vm2, %v872_v36, 0 }
 0x30f   : > { %2109 = vmatpush3.bf16.msra.mxu1 %v894_v37  ;;  %v857_v39 = vpop.trf.xlu0 }
 0x310   : > { %v873_v40 = vpack.c.bf16 %v857_v39, %v857_v39  ;;  %2114 = vmatprep.subr.bf16.mxu1 %v2658_v0 }
 0x312   : > { %v940_v42 = vsel %vm892_vm2, %v873_v40, 0  ;;  %2111 = vmatmul.mubr.msk.bf16.vlgmr.msra.gmra.mrb[4].mxu1 %vm888_vm3, %v832_v38 }
 0x313   : > { %v858_v43 = vpop.trf.xlu0  ;;  %2115 = vmatpush3.bf16.msra.mxu1 %v940_v42  ;;  %2116 = vmatprep.mubr.msk.bf16.mxu1 %vm2659_vm0, %v2658_v0 }
 0x314   : > { %v874_v44 = vpack.c.bf16 %v858_v43, %v858_v43  ;;  %2126 = vmatprep.subr.bf16.mxu1 %v2658_v0 }
 0x316   : > { %v986_v46 = vsel %vm892_vm2, %v874_v44, 0 }
 0x317   : > { %2121 = vmatpush3.bf16.msra.mxu0 %v986_v46  ;;  %v859_v48 = vpop.trf.xlu0 }
 0x318   : > { %v875_v50 = vpack.c.bf16 %v859_v48, %v859_v48  ;;  %2132 = vmatprep.subr.bf16.mxu0 %v2658_v0 }
 0x31a   : > { %2117 = vmatmul.mubr.msk.bf16.vlgmr.msra.gmra.mrb[8].mxu1 %vm888_vm3, %v833_v45  ;;  %2123 = vmatmul.mubr.msk.bf16.vlgmr.msra.gmra.mrb[4].mxu0 %vm888_vm3, %v834_v47  ;;  %v1032_v51 = vsel %vm892_vm2, %v875_v50, 0 }
 0x31b   : > { %2127 = vmatpush3.bf16.msra.mxu1 %v1032_v51  ;;  %v860_v52 = vpop.trf.xlu0  ;;  %2128 = vmatprep.mubr.msk.bf16.mxu1 %vm2659_vm0, %v2658_v0 }
 0x31c   : > { %v876_v53 = vpack.c.bf16 %v860_v52, %v860_v52  ;;  %2134 = vmatprep.mubr.msk.bf16.mxu0 %vm2659_vm0, %v2658_v0  ;;  %2138 = vmatprep.subr.bf16.mxu1 %v2658_v0 }
 0x31e   : > { %v1078_v56 = vsel %vm892_vm2, %v876_v53, 0 }
 0x31f   : > { %2133 = vmatpush3.bf16.msra.mxu0 %v1078_v56  ;;  %v861_v58 = vpop.trf.xlu0 }
 0x320   : > { %v877_v59 = vpack.c.bf16 %v861_v58, %v861_v58  ;;  %2144 = vmatprep.subr.bf16.mxu0 %v2658_v0 }
 0x322   : > { %2129 = vmatmul.mubr.msk.bf16.vlgmr.msra.gmra.mrb[12].mxu1 %vm888_vm3, %v835_v55  ;;  %v1124_v60 = vsel %vm892_vm2, %v877_v59, 0  ;;  %2135 = vmatmul.mubr.msk.bf16.vlgmr.msra.gmra.mrb[8].mxu0 %vm888_vm3, %v836_v57 }
 0x323   : > { %2139 = vmatpush3.bf16.msra.mxu1 %v1124_v60  ;;  %v862_v61 = vpop.trf.xlu0  ;;  %2140 = vmatprep.mubr.msk.bf16.mxu1 %vm2659_vm0, %v2658_v0 }
 0x324   : > { %v878_v63 = vpack.c.bf16 %v862_v61, %v862_v61  ;;  %2146 = vmatprep.mubr.msk.bf16.mxu0 %vm2659_vm0, %v2658_v0  ;;  %2150 = vmatprep.subr.bf16.mxu1 %v2658_v0 }
 0x326   : > { %v1170_v2 = vsel %vm892_vm2, %v878_v63, 0 }
 0x327   : > { %2145 = vmatpush3.bf16.msra.mxu0 %v1170_v2  ;;  %v863_v4 = vpop.trf.xlu0 }
 0x328   : > { %v879_v5 = vpack.c.bf16 %v863_v4, %v863_v4  ;;  %2156 = vmatprep.subr.bf16.mxu0 %v2658_v0 }
 0x32a   : > { %2141 = vmatmul.mubr.msk.bf16.vlgmr.msra.gmra.mrb[16].mxu1 %vm888_vm3, %v837_v1  ;;  %v1216_v6 = vsel %vm892_vm2, %v879_v5, 0  ;;  %2147 = vmatmul.mubr.msk.bf16.vlgmr.msra.gmra.mrb[12].mxu0 %vm888_vm3, %v838_v3 }
 0x32b   : > { %2151 = vmatpush3.bf16.msra.mxu1 %v1216_v6  ;;  %2152 = vmatprep.mubr.msk.bf16.mxu1 %vm2659_vm0, %v2658_v0  ;;  %v3053_v49 = vpop.trf.xlu0 }
 0x32c   : > { %2158 = vmatprep.mubr.msk.bf16.mxu0 %vm2659_vm0, %v2658_v0  ;;  %2162 = vmatprep.subr.bf16.mxu1 %v2658_v0 }
 0x32f   : > { %v3055_v50 = vpop.trf.xlu0 }
 0x332   : > { %2153 = vmatmul.mubr.msk.bf16.vlgmr.msra.gmra.mrb[20].mxu1 %vm888_vm3, %v839_v8 }
 0x333   : > { %2164 = vmatprep.mubr.msk.bf16.mxu1 %vm2659_vm0, %v2658_v0  ;;  %v3057_v51 = vpop.trf.xlu0 }
 0x337   : > { %v3059_v52 = vpop.trf.xlu0 }
 0x33b   : > { %v3061_v53 = vpop.trf.xlu0 }
 0x33f   : > { %v3063_v54 = vpop.trf.xlu0 }
 0x343   : > { %v3065_v55 = vpop.trf.xlu0 }
 0x347   : > { %v3067_v58 = vpop.trf.xlu0 }
 0x3e5   : > { %v930_v9 = vpop.f32.mrb[4].mxu1 }
 0x3e6   : > { %v1258_v10 = vsel %vm888_vm3, %v930_v9, -inf  ;;  %v2112_v11 = vpop.f32.mrb[5].mxu1 }
 0x3e7   : > { %1259 = vmax.xlane.f32.xlu1 %v1258_v10  ;;  %v933_v12 = vpop.f32.mrb[6].mxu1 }
 0x3e8   : > { %v2113_v13 = vpop.f32.mrb[7].mxu1 }
 0x3ed   : > { %v976_v14 = vpop.f32.mrb[8].mxu1  ;;  %v1022_v15 = vpop.f32.mrb[4].mxu0 }
 0x3ee   : > { %v1261_v16 = vsel %vm888_vm3, %v976_v14, -inf  ;;  %v2118_v17 = vpop.f32.mrb[9].mxu1  ;;  %v1264_v18 = vsel %vm888_vm3, %v1022_v15, -inf  ;;  %v2124_v19 = vpop.f32.mrb[5].mxu0 }
 0x3ef   : > { %1262 = vmax.xlane.f32.xlu0 %v1261_v16  ;;  %1265 = vmax.xlane.f32.xlu1 %v1264_v18  ;;  %v979_v20 = vpop.f32.mrb[10].mxu1  ;;  %v1025_v21 = vpop.f32.mrb[6].mxu0 }
 0x3f0   : > { %v2119_v22 = vpop.f32.mrb[11].mxu1  ;;  %v2125_v23 = vpop.f32.mrb[7].mxu0 }
 0x3f5   : > { %v1068_v24 = vpop.f32.mrb[12].mxu1  ;;  %v1114_v25 = vpop.f32.mrb[8].mxu0 }
 0x3f6   : > { %v2130_v26 = vpop.f32.mrb[13].mxu1  ;;  %v1267_v27 = vsel %vm888_vm3, %v1068_v24, -inf  ;;  %v2136_v28 = vpop.f32.mrb[9].mxu0  ;;  %v1270_v32 = vsel %vm888_vm3, %v1114_v25, -inf }
 0x3f7   : > { %1268 = vmax.xlane.f32.xlu1 %v1267_v27  ;;  %v1071_v29 = vpop.f32.mrb[14].mxu1  ;;  %v1117_v30 = vpop.f32.mrb[10].mxu0 }
 0x3f8   : > { %v2131_v31 = vpop.f32.mrb[15].mxu1  ;;  %v2137_v33 = vpop.f32.mrb[11].mxu0 }
 0x3fb   : > { %1271 = vmax.xlane.f32.xlu1 %v1270_v32 }
 0x3fd   : > { %v1160_v34 = vpop.f32.mrb[16].mxu1  ;;  %v1206_v35 = vpop.f32.mrb[12].mxu0 }
 0x3fe   : > { %v2142_v36 = vpop.f32.mrb[17].mxu1  ;;  %v1273_v37 = vsel %vm888_vm3, %v1160_v34, -inf  ;;  %v2148_v38 = vpop.f32.mrb[13].mxu0  ;;  %v1276_v42 = vsel %vm888_vm3, %v1206_v35, -inf }
 0x3ff   : > { %1274 = vmax.xlane.f32.xlu1 %v1273_v37  ;;  %v1163_v39 = vpop.f32.mrb[18].mxu1  ;;  %v1209_v40 = vpop.f32.mrb[14].mxu0 }
 0x400   : > { %v2143_v41 = vpop.f32.mrb[19].mxu1  ;;  %v2149_v43 = vpop.f32.mrb[15].mxu0 }
 0x403   : > { %1277 = vmax.xlane.f32.xlu1 %v1276_v42 }
 0x405   : > { %v1252_v44 = vpop.f32.mrb[20].mxu1 }
 0x406   : > { %v2154_v45 = vpop.f32.mrb[21].mxu1  ;;  %v1279_v46 = vsel %vm888_vm3, %v1252_v44, -inf }
 0x407   : > { %1280 = vmax.xlane.f32.xlu1 %v1279_v46  ;;  %v1255_v47 = vpop.f32.mrb[22].mxu1  ;;  %v880_v45 = vpack.c.bf16 %v3053_v49, %v3053_v49 }
 0x408   : > { %v2155_v48 = vpop.f32.mrb[23].mxu1 }
 0x474   : > { %v1260_v56 = vpop.xlane.xlu1 %1259 }
 0x475   : > { %v1282_v57 = vsub.f32 %v930_v9, %v1260_v56 }
 0x477   : > { %v1290_v59 = vmul.f32 1.442695, %v1282_v57 }
 0x479   : > { %2339 = vpow2.f32 %v1290_v59 }
 0x47c   : > { %v1263_v60 = vpop.xlane.xlu0 %1262  ;;  %v1266_v61 = vpop.xlane.xlu1 %1265 }
 0x47d   : > { %v1283_v62 = vsub.f32 %v976_v14, %v1263_v60  ;;  %v1284_v63 = vsub.f32 %v1022_v15, %v1266_v61 }
 0x47f   : > { %v1292_v1 = vmul.f32 1.442695, %v1283_v62  ;;  %v1294_v2 = vmul.f32 1.442695, %v1284_v63  ;;  %v881_v63 = vpack.c.bf16 %v3055_v50, %v3055_v50 }
 0x481   : > { %2341 = vpow2.f32 %v1292_v1 }
 0x482   : > { %2343 = vpow2.f32 %v1294_v2 }
 0x483   : > { %v2340_v3 = vpop.eup %2339 }
 0x484   : > { %v1269_v4 = vpop.xlane.xlu1 %1268  ;;  %v1306_v5 = vsel %vm888_vm3, %v2340_v3, 0.0 }
 0x485   : > { %v1285_v6 = vsub.f32 %v1068_v24, %v1269_v4  ;;  %1307 = vadd.xlane.f32.xlu1 %v1306_v5 }
 0x487   : > { %v1296_v7 = vmul.f32 1.442695, %v1285_v6  ;;  %v882_v6 = vpack.c.bf16 %v3057_v51, %v3057_v51 }
 0x488   : > { %v1272_v8 = vpop.xlane.xlu1 %1271 }
 0x489   : > { %2345 = vpow2.f32 %v1296_v7  ;;  %v1286_v9 = vsub.f32 %v1114_v25, %v1272_v8 }
 0x48b   : > { %v2342_v10 = vpop.eup %2341  ;;  %v1298_v11 = vmul.f32 1.442695, %v1286_v9 }
 0x48c   : > { %v1275_v12 = vpop.xlane.xlu1 %1274  ;;  %v1309_v13 = vsel %vm888_vm3, %v2342_v10, 0.0  ;;  %v2344_v14 = vpop.eup %2343 }
 0x48d   : > { %2347 = vpow2.f32 %v1298_v11  ;;  %v1287_v15 = vsub.f32 %v1160_v34, %v1275_v12  ;;  %1310 = vadd.xlane.f32.xlu1 %v1309_v13  ;;  %v1312_v18 = vsel %vm888_vm3, %v2344_v14, 0.0 }
 0x48f   : > { %v1300_v16 = vmul.f32 1.442695, %v1287_v15 }
 0x490   : > { %v1278_v17 = vpop.xlane.xlu1 %1277 }
 0x491   : > { %2349 = vpow2.f32 %v1300_v16  ;;  %v1288_v19 = vsub.f32 %v1206_v35, %v1278_v17  ;;  %1313 = vadd.xlane.f32.xlu1 %v1312_v18  ;;  %v885_v18 = vpack.c.bf16 %v3063_v54, %v3063_v54  ;;  %v887_v54 = vpack.c.bf16 %v3067_v58, %v3067_v58 }
 0x493   : > { %v2346_v20 = vpop.eup %2345  ;;  %v1302_v21 = vmul.f32 1.442695, %v1288_v19 }
 0x494   : > { %v1281_v22 = vpop.xlane.xlu1 %1280  ;;  %v1315_v23 = vsel %vm888_vm3, %v2346_v20, 0.0 }
 0x495   : > { %2351 = vpow2.f32 %v1302_v21  ;;  %v1289_v24 = vsub.f32 %v1252_v44, %v1281_v22  ;;  %1316 = vadd.xlane.f32.xlu1 %v1315_v23  ;;  %v2335_v21 = vld [vmem:[#allocation11] sm:$0xff]   ;;  %v2336_v22 = vld [vmem:[#allocation11 + $0x8] sm:$0xff]   ;;  %v2337_v23 = vld [vmem:[#allocation11 + $0x10] sm:$0xff]  }
 0x497   : > { %v2348_v25 = vpop.eup %2347  ;;  %v1304_v26 = vmul.f32 1.442695, %v1289_v24 }
 0x498   : > { %v1318_v27 = vsel %vm888_vm3, %v2348_v25, 0.0 }
 0x499   : > { %2353 = vpow2.f32 %v1304_v26  ;;  %1319 = vadd.xlane.f32.xlu1 %v1318_v27 }
 0x49b   : > { %v2350_v28 = vpop.eup %2349 }
 0x49c   : > { %v1321_v29 = vsel %vm888_vm3, %v2350_v28, 0.0 }
 0x49d   : > { %1322 = vadd.xlane.f32.xlu1 %v1321_v29 }
 0x49f   : > { %v3075_v30 = vpop.eup %2351 }
 0x4a0   : > { %v1324_v31 = vsel %vm888_vm3, %v3075_v30, 0.0 }
 0x4a1   : > { %1325 = vadd.xlane.f32.xlu1 %v1324_v31 }
 0x4a3   : > { %v3079_v32 = vpop.eup %2353 }
 0x4a4   : > { %v1327_v33 = vsel %vm888_vm3, %v3079_v32, 0.0 }
 0x4a5   : > { %1328 = vadd.xlane.f32.xlu1 %v1327_v33 }
 0x512   : > { %v1308_v34 = vpop.xlane.xlu1 %1307 }
 0x513   : > { %2355 = vrcp.f32 %v1308_v34 }
 0x51a   : > { %v1311_v35 = vpop.xlane.xlu1 %1310 }
 0x51b   : > { %2357 = vrcp.f32 %v1311_v35 }
 0x51d   : > { %v2356_v36 = vpop.eup %2355 }
 0x51e   : > { %v1314_v37 = vpop.xlane.xlu1 %1313  ;;  %v1338_v38 = vmul.f32 %v2356_v36, %v2340_v3 }
 0x51f   : > { %2359 = vrcp.f32 %v1314_v37 }
 0x520   : > { %v1346_v39 = vpack.c.bf16 %v1338_v38, %v1338_v38 }
 0x522   : > { %v1317_v40 = vpop.xlane.xlu1 %1316  ;;  %v1358_v41 = vsel %vm888_vm3, %v1346_v39, 0 }
 0x523   : > { %2361 = vrcp.f32 %v1317_v40  ;;  %2157 = vmatpush3.bf16.xpose.msra.mxu0 %v1358_v41 }
 0x524   : > { %2168 = vmatprep.subr.bf16.mxu0 %v2658_v0 }
 0x525   : > { %v2358_v42 = vpop.eup %2357 }
 0x526   : > { %v1320_v43 = vpop.xlane.xlu1 %1319  ;;  %v1339_v44 = vmul.f32 %v2358_v42, %v2342_v10  ;;  %v883_v10 = vpack.c.bf16 %v3059_v52, %v3059_v52 }
 0x527   : > { %2363 = vrcp.f32 %v1320_v43 }
 0x528   : > { %v1347_v46 = vpack.c.bf16 %v1339_v44, %v1339_v44 }
 0x529   : > { %v2360_v47 = vpop.eup %2359 }
 0x52a   : > { %2159 = vmatmul.mubr.msk.bf16.vlgmr.msra.gmra.mrb[16].mxu0 %vm888_vm3, %v880_v45  ;;  %v1323_v48 = vpop.xlane.xlu1 %1322  ;;  %v1404_v56 = vsel %vm888_vm3, %v1347_v46, 0  ;;  %v1340_v57 = vmul.f32 %v2360_v47, %v2344_v14  ;;  %v884_v14 = vpack.c.bf16 %v3061_v53, %v3061_v53 }
 0x52b   : > { %2365 = vrcp.f32 %v1323_v48  ;;  %2163 = vmatpush3.bf16.xpose.msra.mxu1 %v1404_v56  ;;  %2170 = vmatprep.mubr.msk.bf16.mxu0 %vm2659_vm0, %v2658_v0 }
 0x52c   : > { %v1348_v59 = vpack.c.bf16 %v1340_v57, %v1340_v57  ;;  %2174 = vmatprep.subr.bf16.mxu1 %v2658_v0 }
 0x52d   : > { %v2362_v60 = vpop.eup %2361 }
 0x52e   : > { %v1326_v61 = vpop.xlane.xlu1 %1325  ;;  %v1450_v49 = vsel %vm888_vm3, %v1348_v59, 0  ;;  %v1341_v62 = vmul.f32 %v2362_v60, %v2346_v20  ;;  %v886_v20 = vpack.c.bf16 %v3065_v55, %v3065_v55  ;;  %v2338_v55 = vld [vmem:[#allocation11 + $0x18] sm:$0xff]  }
 0x52f   : > { %2367 = vrcp.f32 %v1326_v61  ;;  %2169 = vmatpush3.bf16.xpose.msra.mxu0 %v1450_v49 }
 0x530   : > { %v1349_v1 = vpack.c.bf16 %v1341_v62, %v1341_v62  ;;  %2180 = vmatprep.subr.bf16.mxu0 %v2658_v0 }
 0x531   : > { %v2364_v2 = vpop.eup %2363 }
 0x532   : > { %2165 = vmatmul.mubr.msk.bf16.vlgmr.msra.gmra.mrb[24].mxu1 %vm888_vm3, %v881_v63  ;;  %v1329_v3 = vpop.xlane.xlu1 %1328  ;;  %v1496_v4 = vsel %vm888_vm3, %v1349_v1, 0  ;;  %v1342_v5 = vmul.f32 %v2364_v2, %v2348_v25  ;;  %v2027_v63 = vld [vmem:[#allocation13] ss:$0 sm:$0xff] }
 0x533   : > { %2369 = vrcp.f32 %v1329_v3  ;;  %2175 = vmatpush3.bf16.xpose.msra.mxu1 %v1496_v4  ;;  %2176 = vmatprep.mubr.msk.bf16.mxu1 %vm2659_vm0, %v2658_v0 }
 0x534   : > { %v1350_v7 = vpack.c.bf16 %v1342_v5, %v1342_v5  ;;  %2186 = vmatprep.subr.bf16.mxu1 %v2658_v0 }
 0x535   : > { %v2366_v50 = vpop.eup %2365 }
 0x536   : > { %2171 = vmatmul.mubr.msk.bf16.vlgmr.msra.gmra.mrb[20].mxu0 %vm888_vm3, %v882_v6  ;;  %v1542_v8 = vsel %vm888_vm3, %v1350_v7, 0  ;;  %v1343_v9 = vmul.f32 %v2366_v50, %v2350_v28 }
 0x537   : > { %2181 = vmatpush3.bf16.xpose.msra.mxu0 %v1542_v8  ;;  %2182 = vmatprep.mubr.msk.bf16.mxu0 %vm2659_vm0, %v2658_v0 }
 0x538   : > { %v1351_v11 = vpack.c.bf16 %v1343_v9, %v1343_v9  ;;  %2192 = vmatprep.subr.bf16.mxu0 %v2658_v0 }
 0x539   : > { %v2368_v51 = vpop.eup %2367 }
 0x53a   : > { %2177 = vmatmul.mubr.msk.bf16.vlgmr.msra.gmra.mrb[28].mxu1 %vm888_vm3, %v883_v10  ;;  %v1588_v12 = vsel %vm888_vm3, %v1351_v11, 0  ;;  %v1344_v13 = vmul.f32 %v2368_v51, %v3075_v30 }
 0x53b   : > { %2187 = vmatpush3.bf16.xpose.msra.mxu1 %v1588_v12  ;;  %2188 = vmatprep.mubr.msk.bf16.mxu1 %vm2659_vm0, %v2658_v0 }
 0x53c   : > { %v1352_v15 = vpack.c.bf16 %v1344_v13, %v1344_v13  ;;  %2198 = vmatprep.subr.bf16.mxu1 %v2658_v0 }
 0x53d   : > { %v2370_v52 = vpop.eup %2369 }
 0x53e   : > { %2183 = vmatmul.mubr.msk.bf16.vlgmr.msra.gmra.mrb[24].mxu0 %vm888_vm3, %v884_v14  ;;  %v1634_v16 = vsel %vm888_vm3, %v1352_v15, 0  ;;  %v1345_v17 = vmul.f32 %v2370_v52, %v3079_v32 }
 0x53f   : > { %2193 = vmatpush3.bf16.xpose.msra.mxu0 %v1634_v16  ;;  %2194 = vmatprep.mubr.msk.bf16.mxu0 %vm2659_vm0, %v2658_v0 }
 0x540   : > { %v1353_v19 = vpack.c.bf16 %v1345_v17, %v1345_v17  ;;  %2204 = vmatprep.subr.bf16.mxu0 %v2658_v0 }
 0x542   : > { %2189 = vmatmul.mubr.msk.bf16.vlgmr.msra.gmra.mrb[32].mxu1 %vm888_vm3, %v885_v18  ;;  %v1680_v53 = vsel %vm888_vm3, %v1353_v19, 0 }
 0x543   : > { %2199 = vmatpush3.bf16.xpose.msra.mxu1 %v1680_v53  ;;  %2200 = vmatprep.mubr.msk.bf16.mxu1 %vm2659_vm0, %v2658_v0 }
 0x546   : > { %2195 = vmatmul.mubr.msk.bf16.vlgmr.msra.gmra.mrb[28].mxu0 %vm888_vm3, %v886_v20 }
 0x547   : > { %2212 = vmatprep.mubr.msk.bf16.mxu0 %vm2659_vm0, %v2658_v0  ;;  %2205 = vmatpush3.bf16.msra.mxu0 %v2335_v21 }
 0x548   : > { %2206 = vmatprep.subr.bf16.mxu0 %v2658_v0 }
 0x54a   : > { %2201 = vmatmul.mubr.msk.bf16.vlgmr.msra.gmra.mrb[36].mxu1 %vm888_vm3, %v887_v54 }
 0x54b   : > { %2207 = vmatpush3.bf16.msra.mxu0 %v2336_v22 }
 0x54c   : > { %2208 = vmatprep.subr.bf16.mxu0 %v2658_v0 }
 0x54f   : > { %2209 = vmatpush3.bf16.msra.mxu0 %v2337_v23 }
 0x550   : > { %2210 = vmatprep.subr.bf16.mxu0 %v2658_v0 }
 0x553   : > { %2211 = vmatpush3.bf16.msra.mxu0 %v2338_v55 }
 0x5fd   : > { %v1394_v24 = vpop.f32.mrb[16].mxu0 }
 0x5fe   : > { %1722 = vxpose.xlu1.b32.start [1/8] (short) (narrow) %v1394_v24, 8  ;;  %v2160_v25 = vpop.f32.mrb[17].mxu0 }
 0x5ff   : > { %v1397_v58 = vpop.f32.mrb[18].mxu0 }
 0x600   : > { %v2161_v26 = vpop.f32.mrb[19].mxu0 }
 0x605   : > { %v1440_v27 = vpop.f32.mrb[24].mxu1 }
 0x606   : > { %v2166_v28 = vpop.f32.mrb[25].mxu1  ;;  %1723 = vxpose.xlu1.b32.cont [2/8] (short) (narrow) %v1440_v27, 8 }
 0x607   : > { %v1443_v29 = vpop.f32.mrb[26].mxu1 }
 0x608   : > { %v2167_v30 = vpop.f32.mrb[27].mxu1 }
 0x609   : > { %v1486_v31 = vpop.f32.mrb[20].mxu0 }
 0x60a   : > { %1724 = vxpose.xlu1.b32.cont [3/8] (short) (narrow) %v1486_v31, 8  ;;  %v2172_v32 = vpop.f32.mrb[21].mxu0 }
 0x60b   : > { %v1489_v33 = vpop.f32.mrb[22].mxu0 }
 0x60c   : > { %v2173_v34 = vpop.f32.mrb[23].mxu0 }
 0x60d   : > { %v1532_v35 = vpop.f32.mrb[28].mxu1 }
 0x60e   : > { %v2178_v36 = vpop.f32.mrb[29].mxu1  ;;  %1725 = vxpose.xlu1.b32.cont [4/8] (short) (narrow) %v1532_v35, 8 }
 0x60f   : > { %v1535_v0 = vpop.f32.mrb[30].mxu1 }
 0x610   : > { %v2179_v37 = vpop.f32.mrb[31].mxu1 }
 0x611   : > { %v1578_v38 = vpop.f32.mrb[24].mxu0 }
 0x612   : > { %1726 = vxpose.xlu1.b32.cont [5/8] (short) (narrow) %v1578_v38, 8  ;;  %v2184_v39 = vpop.f32.mrb[25].mxu0 }
 0x613   : > { %v1581_v40 = vpop.f32.mrb[26].mxu0 }
 0x614   : > { %v2185_v41 = vpop.f32.mrb[27].mxu0 }
 0x615   : > { %v1624_v42 = vpop.f32.mrb[32].mxu1 }
 0x616   : > { %v2190_v43 = vpop.f32.mrb[33].mxu1  ;;  %1727 = vxpose.xlu1.b32.cont [6/8] (short) (narrow) %v1624_v42, 8 }
 0x617   : > { %v1627_v44 = vpop.f32.mrb[34].mxu1 }
 0x618   : > { %v2191_v45 = vpop.f32.mrb[35].mxu1 }
 0x619   : > { %v1670_v46 = vpop.f32.mrb[28].mxu0 }
 0x61a   : > { %1728 = vxpose.xlu1.b32.cont [7/8] (short) (narrow) %v1670_v46, 8  ;;  %v2196_v47 = vpop.f32.mrb[29].mxu0 }
 0x61b   : > { %v1673_v48 = vpop.f32.mrb[30].mxu0 }
 0x61c   : > { %v2197_v56 = vpop.f32.mrb[31].mxu0 }
 0x61d   : > { %v1716_v57 = vpop.f32.mrb[36].mxu1 }
 0x61e   : > { %v2202_v59 = vpop.f32.mrb[37].mxu1  ;;  %1729 = vxpose.xlu1.b32.end [8/8] (short) (narrow) %v1716_v57, 8 }
 0x61f   : > { %v1719_v60 = vpop.f32.mrb[38].mxu1 }
 0x620   : > { %v2203_v61 = vpop.f32.mrb[39].mxu1 }
 0x682   : > { %v1738_v49 = vpop.trf.xlu1 }
 0x683   : > { %v1754_v62 = vpack.c.bf16 %v1738_v49, %v1738_v49 }
 0x685   : > { %2213 = vmatmul.mubr.msk.bf16.vlgmr.msra.gmra.mrb[32].mxu0 %vm416_vm1, %v1754_v62 }
 0x758   : > { %v1831_v1 = vpop.f32.mrb[32].mxu0 }
 0x759   : > { %v1832_v2 = vadd.f32 %v2027_v63, %v1831_v1  ;;  %v2214_v3 = vpop.f32.mrb[33].mxu0 }
 0x75a   : > { %v1834_v4 = vpop.f32.mrb[34].mxu0 }
 0x75b   : > { %v2215_v5 = vpop.f32.mrb[35].mxu0  ;;  %1837 = vst.msk [vmem:[%s374_s20] sm:$0xff] %vm416_vm1, %v1832_v2 }
 0x75c   : > { %2582 = shalt.err (!%p2579_p0)
}
 0x75d   : > { %s2583_s13 = scalar_lea.hbm %s3147_s22, 128  ;;  %s2587_s8 = scalar_lea.hbm %s3199_s7, 256 }
 0x75e   : > { %p2584_p4 = scmp.ne.s32.totalorder %s3147_s22, %s2583_s13  ;;  %p2588_p8 = scmp.lt.u32.totalorder %s3147_s22, %s3199_s7 }
 0x75f   : > { %p2589_p5 = scmp.lt.u32.totalorder %s2587_s8, %s2583_s13  ;;  %p2591_p6 = scmp.lt.u32.totalorder %s2583_s13, %s3147_s22 }
 0x760   : > { %p2585_p10 = pnand %p2584_p4, %p3219_p9 }
 0x761   : > { %p2590_p7 = por %p2589_p5, %p2588_p8 }
 0x762   : > { %p2586_p11 = pneg %p2585_p10 }
 0x763   : > { %p2592_p12 = por %p2591_p6, %p2590_p7 }
 0x765   : > { %p2593_p13 = pnand %p2592_p12, %p2586_p11 }
 0x767   : > { %2596 = shalt.err (!%p2593_p13)
}
 0x768   : > { %2242 = dma.vmem_to_hbm [thread:$0]  (%p3219_p9), %s3149_s9, 128, %s3147_s22, %s1839_s30  }
 0x769 PF: > { %s1864_s19 = sand.u32 1, %s2635_s24   ;;  %p3220_p1 = scmp.ne.s32.totalorder %s3210_s15, 0 }
 0x76a   : > { %p3221_p3 = scmp.ge.s32.totalorder %s2647_s27, 2  ;;  %s1865_s21 = scalar_lea.sflag [#allocation4], %s1864_s19 }
 0x76c   : > { %p2268_p2 = pnand %p3221_p3, %p3220_p1 }
 0x76e   : > { %2630 = dma.done.wait (!%p2268_p2), %s1865_s21, 128  }
 0x76f   : > { %2632 = vsyncadd (!%p2268_p2), %s1865_s21, 4294967168  ;;  %p23_p0 = scmp.ge.s32.totalorder %s2886_s11, 4   ;;  %s3222_s24 = smov %s2639_s25 }
 0x770   : > { %s3223_s25 = smov %s2643_s26  ;;  %s3224_s26 = smov %s2897_s23 }
 0x771   : > { %s3225_s27 = smov %s2886_s11  ;;  %25 = sbr.rel (!%p23_p0) target bundleno = 8 (0x8), region = 117 }
 0x778   :  { %1870 = vsyncpa [#allocation3], 1 }
 0x779   :  { %1872 = vsyncpa [#allocation3 + $0x1], 1 }
 0x77a   :  { %1873 = vsyncpa [#allocation6], 1 }
 0x77b   :  { %1874 = vsyncpa [#allocation9], 1 }
 0x77c   :  { %1875 = vsyncpa [#allocation12], 1 }
 0x77d   :  { %1876 = vsyncpa [#allocation4], 1 }
 0x77e   :  { %1878 = vsyncpa [#allocation4 + $0x1], 1 }

</bundles_post_ra>
